<compile_context>
chip_gen: v6e
topology: v6e:2x2x1
jax: 0.10.0
libtpu: 0.0.40
codegen_flags: <defaults>
</compile_context>

<pallas_src>
import functools

import jax
import jax.numpy as jnp
import numpy as np
from jax.experimental import pallas as pl
from jax.experimental.pallas import tpu as pltpu


def _round_up(v, m):
    return ((v + m - 1) // m) * m


# ---------------------------------------------------------------------------
# Pass 1: global average pooling over the spatial (lane) axis.
#   x block: (R, S); accumulator: (R, 128) f32 VMEM scratch; output block
#   (R, 1) is written once per row block at the last spatial step.
def _pool_kernel(x_ref, mean_ref, acc_ref, *, hw, s_tile, inv_hw):
    s = pl.program_id(1)

    @pl.when(s == 0)
    def _():
        acc_ref[...] = jnp.zeros_like(acc_ref)

    x = x_ref[...].astype(jnp.float32)                      # (R, S), f32 accumulate

    # Mask out-of-range lanes (only emitted when H*W is not a multiple of S).
    if hw % s_tile != 0:
        lane = jax.lax.broadcasted_iota(jnp.int32, x.shape, 1) + s * s_tile
        x = jnp.where(lane < hw, x, 0.0)

    # Fold the S-wide tile into the 128-lane accumulator: pure VALU vreg adds
    # (static lane-aligned slices; no XLU, no narrow stores, per step).
    acc = acc_ref[...]
    for k in range(s_tile // 128):
        acc = acc + x[:, k * 128:(k + 1) * 128]
    acc_ref[...] = acc

    @pl.when(s == pl.num_programs(1) - 1)
    def _():
        # One cross-lane reduce + one (R, 1) store per row block.
        mean_ref[...] = jnp.sum(acc_ref[...], axis=1, keepdims=True) * inv_hw


# ---------------------------------------------------------------------------
# Pass 3: apply the per-(n,c) attention scale (pure mem-bound elementwise).
def _scale_kernel(x_ref, scale_ref, o_ref):
    o_ref[...] = (x_ref[...].astype(jnp.float32) * scale_ref[...]).astype(o_ref.dtype)


def _pick_tiles(nc, hw, itemsize):
    """Lane-dense tile selection with a cdiv grid (no exact-divisor collapse)."""
    sub = max(8, 32 // itemsize)          # sublane multiple: 8 f32 / 16 bf16 / 32 int8
    hw_pad = _round_up(hw, 128)
    nc_pad = _round_up(nc, sub)

    target_bytes = 2 << 20                # ~2 MiB x blocks: near-roofline on all gens,
    target_elems = max(1, target_bytes // itemsize)   # VMEM-safe on v5e (16 MiB scoped)

    s_cap = 8192                          # keep the per-step lane-fold unroll modest
    S = max(128, min(hw_pad, s_cap))      # multiple of 128 by construction
    R = max(sub, min(nc_pad, (target_elems // S) // sub * sub))
    grid = (pl.cdiv(nc, R), pl.cdiv(hw, S))
    return R, S, grid


def channel_attention(x, w1, b1, w2, b2):
    """x: (N, C, H, W).  w1: (Cr, C), b1: (Cr,), w2: (C, Cr), b2: (C,)."""
    N, C, H, W = x.shape
    HW = H * W
    NC = N * C

    itemsize = jnp.dtype(x.dtype).itemsize
    R, S, grid = _pick_tiles(NC, HW, itemsize)

    # (N, C, H, W) -> (N*C, H*W): rows -> sublanes, spatial -> lanes.
    # reshape is a free view (contiguous); no host-side padding / slicing.
    x2 = x.reshape(NC, HW)

    # ---- Pass 1: pooled mean per (n, c) row (pallas) ------------------------
    pooled_rows = pl.pallas_call(
        functools.partial(_pool_kernel, hw=HW, s_tile=S, inv_hw=1.0 / float(HW)),
        out_shape=jax.ShapeDtypeStruct((NC, 1), jnp.float32),
        grid=grid,
        in_specs=[pl.BlockSpec((R, S), lambda r, s: (r, s))],
        out_specs=pl.BlockSpec((R, 1), lambda r, s: (r, 0)),
        scratch_shapes=[pltpu.VMEM((R, 128), jnp.float32)],
        compiler_params=pltpu.CompilerParams(
            dimension_semantics=("parallel", "arbitrary")),
    )(x2)

    # ---- Pass 2: tiny squeeze-excite MLP in plain jnp (XLA fuses it) --------
    pooled = pooled_rows.reshape(N, C)                                  # (N, C) f32
    y1 = jnp.maximum(pooled @ w1.astype(jnp.float32).T
                     + b1.astype(jnp.float32), 0.0)                     # (N, Cr)
    y2 = y1 @ w2.astype(jnp.float32).T + b2.astype(jnp.float32)         # (N, C)
    scale_rows = jax.nn.sigmoid(y2).reshape(NC, 1)                      # (N*C, 1) f32

    # ---- Pass 3: out = x * scale (both axes independent / parallel) ---------
    out2 = pl.pallas_call(
        _scale_kernel,
        out_shape=jax.ShapeDtypeStruct((NC, HW), x.dtype),
        grid=grid,
        in_specs=[
            pl.BlockSpec((R, S), lambda r, s: (r, s)),
            pl.BlockSpec((R, 1), lambda r, s: (r, 0)),
        ],
        out_specs=pl.BlockSpec((R, S), lambda r, s: (r, s)),
        compiler_params=pltpu.CompilerParams(
            dimension_semantics=("parallel", "parallel")),
    )(x2, scale_rows)

    return out2.reshape(N, C, H, W)


def _reference(x, w1, b1, w2, b2):
    # pure-JAX reference of the PyTorch forward
    pooled = jnp.mean(x.astype(jnp.float32), axis=(2, 3))           # (N, C)
    y1 = jnp.maximum(pooled @ w1.T + b1, 0.0)                       # (N, Cr)
    y2 = 1.0 / (1.0 + jnp.exp(-(y1 @ w2.T + b2)))                   # (N, C)
    return x * y2[:, :, None, None].astype(x.dtype)


def _make_params(key, C, Cr):
    k1, k2, k3, k4 = jax.random.split(key, 4)
    bound1 = 1.0 / np.sqrt(C)
    w1 = jax.random.uniform(k1, (Cr, C), jnp.float32, -bound1, bound1)
    b1 = jax.random.uniform(k2, (Cr,), jnp.float32, -bound1, bound1)
    bound2 = 1.0 / np.sqrt(Cr)
    w2 = jax.random.uniform(k3, (C, Cr), jnp.float32, -bound2, bound2)
    b2 = jax.random.uniform(k4, (C,), jnp.float32, -bound2, bound2)
    return w1, b1, w2, b2


if __name__ == "__main__":
    # ChannelAttention(num_features=4, reduction=2) on input (2, 4, 16, 16)
    N, C, H, W = 2, 4, 16, 16
    reduction = 2
    Cr = C // reduction

    key = jax.random.PRNGKey(0)
    kx, kp = jax.random.split(key)
    x = jax.random.normal(kx, (N, C, H, W), dtype=jnp.float32)
    w1, b1, w2, b2 = _make_params(kp, C, Cr)

    out = jax.block_until_ready(channel_attention(x, w1, b1, w2, b2))
    ref = _reference(x, w1, b1, w2, b2)
    np.testing.assert_allclose(np.asarray(out), np.asarray(ref),
                               rtol=1e-5, atol=1e-5)

    # Ragged-shape check: exercises cdiv grids + in-kernel lane masking
    # (NC=12 not a multiple of 8, HW=130 not a multiple of 128).
    N2, C2, H2, W2 = 2, 6, 10, 13
    Cr2 = C2 // reduction
    key2 = jax.random.PRNGKey(1)
    kx2, kp2 = jax.random.split(key2)
    xr = jax.random.normal(kx2, (N2, C2, H2, W2), dtype=jnp.float32)
    w1r, b1r, w2r, b2r = _make_params(kp2, C2, Cr2)

    out_r = jax.block_until_ready(channel_attention(xr, w1r, b1r, w2r, b2r))
    ref_r = _reference(xr, w1r, b1r, w2r, b2r)
    np.testing.assert_allclose(np.asarray(out_r), np.asarray(ref_r),
                               rtol=1e-5, atol=1e-5)

    print("KERNEL_OK")
</pallas_src>

<mosaic_0001>
module attributes {stable_mosaic.version = 11 : i64} {
  func.func @_pool_kernel(%arg0: i32, %arg1: i32, %arg2: memref<8x256xf32, #tpu.memory_space<vmem>>, %arg3: memref<8x1xf32, #tpu.memory_space<vmem>>, %arg4: memref<8x128xf32, #tpu.memory_space<vmem>>) attributes {dimension_semantics = [#tpu.dimension_semantics<parallel>, #tpu.dimension_semantics<arbitrary>], iteration_bounds = array<i64: 1, 1>, scalar_prefetch = 0 : i64, scratch_operands = 1 : i64, tpu.core_type = #tpu.core_type<tc>, window_params = [{transform_indices = @transform_0, window_bounds = array<i64: 8, 256>}, {transform_indices = @transform_1, window_bounds = array<i64: 8, 1>}]} {
    %c0_i32 = arith.constant 0 : i32
    %0 = arith.cmpi eq, %arg1, %c0_i32 : i32
    %1 = arith.extui %0 : i1 to i32
    %c0_i32_0 = arith.constant 0 : i32
    %2 = arith.cmpi ne, %1, %c0_i32_0 : i32
    scf.if %2 {
      %cst = arith.constant 0.000000e+00 : f32
      %13 = vector.broadcast %cst : f32 to vector<8x128xf32>
      %c0_8 = arith.constant 0 : index
      %c0_9 = arith.constant 0 : index
      %14 = vector.load %arg4[%c0_8, %c0_9] : memref<8x128xf32, #tpu.memory_space<vmem>>, vector<8x128xf32>
      tpu.vector_store %arg4[%c0_8, %c0_9], %13 {strides = array<i32>} : memref<8x128xf32, #tpu.memory_space<vmem>>, vector<8x128xf32>,
    } else {
    }
    %c0 = arith.constant 0 : index
    %c0_1 = arith.constant 0 : index
    %3 = vector.load %arg2[%c0, %c0_1] : memref<8x256xf32, #tpu.memory_space<vmem>>, vector<8x256xf32>
    %c0_2 = arith.constant 0 : index
    %c0_3 = arith.constant 0 : index
    %4 = vector.load %arg4[%c0_2, %c0_3] : memref<8x128xf32, #tpu.memory_space<vmem>>, vector<8x128xf32>
    %5 = vector.extract_strided_slice %3 {offsets = [0, 0], sizes = [8, 128], strides = [1, 1]} : vector<8x256xf32> to vector<8x128xf32>
    %6 = arith.addf %4, %5 : vector<8x128xf32>
    %7 = vector.extract_strided_slice %3 {offsets = [0, 128], sizes = [8, 128], strides = [1, 1]} : vector<8x256xf32> to vector<8x128xf32>
    %8 = arith.addf %6, %7 : vector<8x128xf32>
    %c0_4 = arith.constant 0 : index
    %c0_5 = arith.constant 0 : index
    %9 = vector.load %arg4[%c0_4, %c0_5] : memref<8x128xf32, #tpu.memory_space<vmem>>, vector<8x128xf32>
    tpu.vector_store %arg4[%c0_4, %c0_5], %8 {strides = array<i32>} : memref<8x128xf32, #tpu.memory_space<vmem>>, vector<8x128xf32>,
    %c0_i32_6 = arith.constant 0 : i32
    %10 = arith.cmpi eq, %arg1, %c0_i32_6 : i32
    %11 = arith.extui %10 : i1 to i32
    %c0_i32_7 = arith.constant 0 : i32
    %12 = arith.cmpi ne, %11, %c0_i32_7 : i32
    scf.if %12 {
      %c0_8 = arith.constant 0 : index
      %c0_9 = arith.constant 0 : index
      %13 = vector.load %arg4[%c0_8, %c0_9] : memref<8x128xf32, #tpu.memory_space<vmem>>, vector<8x128xf32>
      %cst = arith.constant dense<0.000000e+00> : vector<8xf32>
      %14 = vector.multi_reduction <add>, %13, %cst [1] : vector<8x128xf32> to vector<8xf32>
      %15 = vector.shape_cast %14 : vector<8xf32> to vector<8x1xf32>
      %cst_10 = arith.constant 3.906250e-03 : f32
      %16 = vector.broadcast %cst_10 : f32 to vector<8x1xf32>
      %17 = arith.mulf %15, %16 : vector<8x1xf32>
      %c0_11 = arith.constant 0 : index
      %c0_12 = arith.constant 0 : index
      %18 = vector.load %arg3[%c0_11, %c0_12] : memref<8x1xf32, #tpu.memory_space<vmem>>, vector<8x1xf32>
      tpu.vector_store %arg3[%c0_11, %c0_12], %17 {strides = array<i32>} : memref<8x1xf32, #tpu.memory_space<vmem>>, vector<8x1xf32>,
    } else {
    }
    return
  }
  func.func @transform_0(%arg0: i32, %arg1: i32) -> (i32, i32) {
    %c0_i32 = arith.constant 0 : i32
    return %arg0, %arg1 : i32, i32
  }
  func.func @transform_1(%arg0: i32, %arg1: i32) -> (i32, i32) {
    %c0_i32 = arith.constant 0 : i32
    %c0_i32_0 = arith.constant 0 : i32
    return %arg0, %c0_i32 : i32, i32
  }
}

</mosaic_0001>

<bundles_post_ra>
// kernel: tpu_custom_call.1
= control target key start
LH: loop header
LB: loop body
LE: loop exit
PB: predicated region body
PF: predicated region fallthrough
CT: control target
= control target key end

     0   :  { %6 = vsyncpa [#allocation4], 0  ;;  %s68_s6 = smov [#allocation3]   ;;  %s85_s0 = inlined_call_operand.hbm [shape: f32[8,256], index: 0, kind: input, shape index: {}]   ;;  %s86_s1 = inlined_call_operand.vmem [shape: f32[8,1], index: 1, kind: output, shape index: {}]  }
   0x1   :  { %s13_s7 = sshll.u32 %s68_s6, 4  ;;  %s14_s7 = int_to_ptr.vmem [resolvable:$true] %s13_s7 }
   0x2   :  { %s54_s8 = scalar_lea.vmem %s14_s7, 256  ;;  %p59_p1 = scmp.lt.s32.totalorder %s14_s7, %s14_s7 }
   0x3   :  { %p55_p0 = scmp.ne.s32.totalorder %s14_s7, %s54_s8  ;;  %p60_p2 = scmp.lt.s32.totalorder %s54_s8, %s54_s8 }
   0x5   :  { %p61_p3 = por %p60_p2, %p59_p1 }
   0x7   :  { %p62_p4 = pnand %p61_p3, %p55_p0 }
   0x9   :  { %65 = shalt.err (!%p62_p4)
}
   0xa   :  { %16 = dma.hbm_to_vmem [thread:$0]  %s85_s0, 256, %s14_s7, [#allocation4]  }
   0xb   :  { %66 = dma.done.wait [#allocation4], 256  }
   0xc   :  { %67 = vsyncadd [#allocation4], 4294967040  ;;  %v25_v0 = vld [vmem:[#allocation3] sm:$0xff]  ;;  %v26_v1 = vld [vmem:[#allocation3 + $0x8] sm:$0xff]  ;;  %vm38_vm0 = vcmask 7168  }
   0xd   :  { %v29_v2 = vadd.f32 %v26_v1, %v25_v0 }
   0xf   :  { %35 = vadd.xlane.f32.xlu0 %v29_v2 }
  0x98   :  { %v36_v3 = vpop.xlane.xlu0 %35 }
  0x99   :  { %v37_v4 = vmul.f32 0.00390625, %v36_v3 }
  0x9b   :  { %39 = vst.msk [vmem:[%s86_s1] sm:$0xff] %vm38_vm0, %v37_v4 }
  0x9c   :  { %44 = vsyncpa [#allocation4], 1 }

</bundles_post_ra>
